<compile_context>
chip_gen: v6e
topology: v6e:2x2x1
jax: 0.10.0
libtpu: 0.0.40
codegen_flags: <defaults>
</compile_context>

<pallas_src>
import functools

import jax
import jax.numpy as jnp
from jax import lax
from jax.experimental import pallas as pl
from jax.experimental.pallas import tpu as pltpu

TILE_B = 128          # batch rows per grid step (fills MXU M on v5e; good on v6e/v7x)
_UNROLL_LIMIT = 4     # unroll the block loop up to this many MiniNN blocks


def _round_up(x, m):
    return ((x + m - 1) // m) * m


def _bigger_nn_kernel(n_blocks,
                      x_ref,    # (TILE_B, P) bf16, aug lane (col P-1) == 1
                      w1_ref,   # (n, P, P)   bf16, bias folded into row P-1
                      w2_ref,   # (n, P, P)   bf16, bias folded into row P-1
                      out_ref): # (TILE_B, P) f32
    h = x_ref[...]                                   # bf16
    if n_blocks <= _UNROLL_LIMIT:
        # Static unroll (small n): 2 MXU matmuls + 1 VPU ReLU per block.
        for i in range(n_blocks):
            t = jnp.dot(h.astype(jnp.bfloat16), w1_ref[i],
                        preferred_element_type=jnp.float32)
            t = jnp.maximum(t, 0.0)                  # ReLU in f32 (carry lane stays 1)
            h = jnp.dot(t.astype(jnp.bfloat16), w2_ref[i],
                        preferred_element_type=jnp.float32)
    else:
        # Bounded live ranges for larger n: dynamic first-axis ref indexing.
        def body(i, hf):
            t = jnp.dot(hf.astype(jnp.bfloat16), w1_ref[i],
                        preferred_element_type=jnp.float32)
            t = jnp.maximum(t, 0.0)
            return jnp.dot(t.astype(jnp.bfloat16), w2_ref[i],
                           preferred_element_type=jnp.float32)
        h = lax.fori_loop(0, n_blocks, body, h.astype(jnp.float32))
    out_ref[...] = h.astype(out_ref.dtype)           # lane-dense, unmasked store


def fold_and_pad_params(params, *, n_mini, lane=128, weight_dtype=jnp.bfloat16):
    """Fold the activation-free input/final Linear layers into the adjacent
    MiniNN matmuls, fold the biases into a spare weight row (affine
    augmentation with a constant-1 carry lane), and zero-pad everything to a
    uniform lane-dense (P, P) shape in bf16."""
    d_in = params["w_in"].shape[0]
    hid = params["w_in"].shape[1]
    d_out = params["w_fc"].shape[1]
    # +1 spare lane for the bias carry; stays 128 for these sizes.
    P = _round_up(max(d_in, hid, d_out) + 1, lane)
    aug = P - 1

    w1 = [params["w1"][i] for i in range(n_mini)]
    b1 = [params["b1"][i] for i in range(n_mini)]
    w2 = [params["w2"][i] for i in range(n_mini)]
    b2 = [params["b2"][i] for i in range(n_mini)]

    # Fold input layer (no activation) into block 0's fc1.
    b1[0] = params["b_in"] @ w1[0] + b1[0]               # (1, H)
    w1[0] = params["w_in"] @ w1[0]                       # (D_in, H)
    # Fold final fc (no activation before it) into last block's fc2.
    b2[-1] = b2[-1] @ params["w_fc"] + params["b_fc"]    # (1, D_out)
    w2[-1] = w2[-1] @ params["w_fc"]                     # (H, D_out)

    def aug_pad(w, b):
        # [W 0; b 0] with a 1 at (aug, aug) so the carry lane survives the matmul.
        r, c = w.shape
        wp = jnp.zeros((P, P), jnp.float32)
        wp = wp.at[:r, :c].set(w)
        wp = wp.at[aug, :c].set(b[0])
        wp = wp.at[aug, aug].set(1.0)
        return wp.astype(weight_dtype)

    return {
        "w1": jnp.stack([aug_pad(w1[i], b1[i]) for i in range(n_mini)]),  # (n, P, P)
        "w2": jnp.stack([aug_pad(w2[i], b2[i]) for i in range(n_mini)]),  # (n, P, P)
        "d_out": d_out,                                                   # static int
        "P": P,
        "aug": aug,
    }


def prepare_input(x, folded, *, tile_b=TILE_B, act_dtype=jnp.bfloat16):
    """Pad x to (Bp, P) with zeros, set the constant-1 carry lane, cast to bf16.
    Do this once outside the hot loop (steady state pays no per-call pad)."""
    B, d_in = x.shape
    P, aug = folded["P"], folded["aug"]
    Bp = _round_up(max(B, 1), tile_b)
    xp = jnp.zeros((Bp, P), jnp.float32)
    xp = xp.at[:B, :d_in].set(x.astype(jnp.float32))
    xp = xp.at[:, aug].set(1.0)                       # bias carry lane
    return xp.astype(act_dtype)


def bigger_nn_forward_prepared(x_pad, folded, *, tile_b=TILE_B):
    """x_pad: (Bp, P) bf16 from prepare_input.  Returns padded (Bp, P) f32."""
    Bp, P = x_pad.shape
    n = folded["w1"].shape[0]
    assert Bp % tile_b == 0
    kernel = functools.partial(_bigger_nn_kernel, n)

    return pl.pallas_call(
        kernel,
        out_shape=jax.ShapeDtypeStruct((Bp, P), jnp.float32),
        grid=(Bp // tile_b,),
        in_specs=[
            pl.BlockSpec((tile_b, P), lambda b: (b, 0)),        # batch tile
            pl.BlockSpec((n, P, P), lambda b: (0, 0, 0)),       # w1: resident, DMA once
            pl.BlockSpec((n, P, P), lambda b: (0, 0, 0)),       # w2: resident, DMA once
        ],
        out_specs=pl.BlockSpec((tile_b, P), lambda b: (b, 0)),
        compiler_params=pltpu.CompilerParams(
            dimension_semantics=("parallel",)),                 # 2 TCs on v7x
    )(x_pad, folded["w1"], folded["w2"])


def bigger_nn_forward(x, folded, *, tile_b=TILE_B):
    """Convenience wrapper: pad -> kernel -> slice back to (B, D_out)."""
    B = x.shape[0]
    x_pad = prepare_input(x, folded, tile_b=tile_b)
    out_pad = bigger_nn_forward_prepared(x_pad, folded, tile_b=tile_b)
    return out_pad[:B, :folded["d_out"]]


def init_params(key, *, n_mini, input_dim, output_dim, hidden_dim):
    """Deterministic init mimicking PyTorch nn.Linear default (U(-1/sqrt(fan_in), +)).
    Weights stored pre-transposed as (in, out) relative to PyTorch's (out, in)."""
    def linear(k, fan_in, fan_out):
        kw, kb = jax.random.split(k)
        bound = 1.0 / jnp.sqrt(fan_in)
        w = jax.random.uniform(kw, (fan_in, fan_out), jnp.float32, -bound, bound)
        b = jax.random.uniform(kb, (1, fan_out), jnp.float32, -bound, bound)
        return w, b

    keys = jax.random.split(key, 2 + 2 * n_mini)
    w_in, b_in = linear(keys[0], input_dim, hidden_dim)
    w1s, b1s, w2s, b2s = [], [], [], []
    for i in range(n_mini):
        w1, b1 = linear(keys[1 + 2 * i], hidden_dim, hidden_dim)
        w2, b2 = linear(keys[2 + 2 * i], hidden_dim, hidden_dim)
        w1s.append(w1); b1s.append(b1); w2s.append(w2); b2s.append(b2)
    w_fc, b_fc = linear(keys[1 + 2 * n_mini], hidden_dim, output_dim)

    return {
        "w_in": w_in, "b_in": b_in,
        "w1": jnp.stack(w1s), "b1": jnp.stack(b1s),
        "w2": jnp.stack(w2s), "b2": jnp.stack(b2s),
        "w_fc": w_fc, "b_fc": b_fc,
    }


def reference_forward(x, params, *, n_mini):
    """Plain-JAX f32 reference matching the PyTorch semantics (unfolded, unpadded)."""
    h = x @ params["w_in"] + params["b_in"]
    for i in range(n_mini):
        t = jnp.maximum(h @ params["w1"][i] + params["b1"][i], 0.0)
        h = t @ params["w2"][i] + params["b2"][i]
    return h @ params["w_fc"] + params["b_fc"]


if __name__ == "__main__":
    # Small shapes consistent with BiggerNN(n, input_dim, output_dim, hidden_dim)
    N_MINI = 3
    INPUT_DIM = 16
    OUTPUT_DIM = 4
    HIDDEN_DIM = 32
    BATCH = 8

    key = jax.random.PRNGKey(0)
    k_params, k_x = jax.random.split(key)

    params = init_params(k_params, n_mini=N_MINI, input_dim=INPUT_DIM,
                         output_dim=OUTPUT_DIM, hidden_dim=HIDDEN_DIM)
    x = jax.random.normal(k_x, (BATCH, INPUT_DIM), jnp.float32)

    folded = fold_and_pad_params(params, n_mini=N_MINI)

    # Steady-state path: pad/augment once, then run the kernel.
    x_pad = prepare_input(x, folded)
    out_pad = bigger_nn_forward_prepared(x_pad, folded)
    out = jax.block_until_ready(out_pad)[:BATCH, :folded["d_out"]]

    ref = reference_forward(x, params, n_mini=N_MINI)
    assert out.shape == (BATCH, OUTPUT_DIM)
    # bf16 weights/activations + fold reassociation: loosened tolerance vs f32 ref.
    assert jnp.allclose(out, ref, atol=5e-2, rtol=5e-2), "Pallas output mismatch"

    print("KERNEL_OK")
</pallas_src>

<mosaic_0001>
module attributes {stable_mosaic.version = 11 : i64} {
  func.func @_bigger_nn_kernel(%arg0: i32, %arg1: memref<128x128xbf16, #tpu.memory_space<vmem>>, %arg2: memref<3x128x128xbf16, #tpu.memory_space<vmem>>, %arg3: memref<3x128x128xbf16, #tpu.memory_space<vmem>>, %arg4: memref<128x128xf32, #tpu.memory_space<vmem>>) attributes {dimension_semantics = [#tpu.dimension_semantics<parallel>], iteration_bounds = array<i64: 1>, scalar_prefetch = 0 : i64, scratch_operands = 0 : i64, tpu.core_type = #tpu.core_type<tc>, window_params = [{transform_indices = @transform_0, window_bounds = array<i64: 128, 128>}, {pipeline_mode = #tpu.pipeline_mode<synchronous>, transform_indices = @transform_1, window_bounds = array<i64: 3, 128, 128>}, {pipeline_mode = #tpu.pipeline_mode<synchronous>, transform_indices = @transform_2, window_bounds = array<i64: 3, 128, 128>}, {transform_indices = @transform_3, window_bounds = array<i64: 128, 128>}]} {
    %c0 = arith.constant 0 : index
    %c0_0 = arith.constant 0 : index
    %0 = vector.load %arg1[%c0, %c0_0] : memref<128x128xbf16, #tpu.memory_space<vmem>>, vector<128x128xbf16>
    %c0_1 = arith.constant 0 : index
    %c0_2 = arith.constant 0 : index
    %c0_3 = arith.constant 0 : index
    %1 = vector.load %arg2[%c0_1, %c0_2, %c0_3] : memref<3x128x128xbf16, #tpu.memory_space<vmem>>, vector<1x128x128xbf16>
    %2 = vector.shape_cast %1 : vector<1x128x128xbf16> to vector<128x128xbf16>
    %cst = arith.constant dense<0.000000e+00> : vector<128x128xf32>
    %3 = tpu.matmul %0, %2, %cst {dimension_numbers = #tpu.dot_dimension_numbers<[1], [0], [0], [1], [0, 0, 1, 1], [], []>} : vector<128x128xbf16>, vector<128x128xbf16>, vector<128x128xf32> -> vector<128x128xf32>
    %cst_4 = arith.constant 0.000000e+00 : f32
    %4 = vector.broadcast %cst_4 : f32 to vector<128x128xf32>
    %5 = arith.maximumf %3, %4 : vector<128x128xf32>
    %6 = arith.truncf %5 : vector<128x128xf32> to vector<128x128xbf16>
    %c0_5 = arith.constant 0 : index
    %c0_6 = arith.constant 0 : index
    %c0_7 = arith.constant 0 : index
    %7 = vector.load %arg3[%c0_5, %c0_6, %c0_7] : memref<3x128x128xbf16, #tpu.memory_space<vmem>>, vector<1x128x128xbf16>
    %8 = vector.shape_cast %7 : vector<1x128x128xbf16> to vector<128x128xbf16>
    %cst_8 = arith.constant dense<0.000000e+00> : vector<128x128xf32>
    %9 = tpu.matmul %6, %8, %cst_8 {dimension_numbers = #tpu.dot_dimension_numbers<[1], [0], [0], [1], [0, 0, 1, 1], [], []>} : vector<128x128xbf16>, vector<128x128xbf16>, vector<128x128xf32> -> vector<128x128xf32>
    %10 = arith.truncf %9 : vector<128x128xf32> to vector<128x128xbf16>
    %c1 = arith.constant 1 : index
    %c0_9 = arith.constant 0 : index
    %c0_10 = arith.constant 0 : index
    %11 = vector.load %arg2[%c1, %c0_9, %c0_10] : memref<3x128x128xbf16, #tpu.memory_space<vmem>>, vector<1x128x128xbf16>
    %12 = vector.shape_cast %11 : vector<1x128x128xbf16> to vector<128x128xbf16>
    %cst_11 = arith.constant dense<0.000000e+00> : vector<128x128xf32>
    %13 = tpu.matmul %10, %12, %cst_11 {dimension_numbers = #tpu.dot_dimension_numbers<[1], [0], [0], [1], [0, 0, 1, 1], [], []>} : vector<128x128xbf16>, vector<128x128xbf16>, vector<128x128xf32> -> vector<128x128xf32>
    %cst_12 = arith.constant 0.000000e+00 : f32
    %14 = vector.broadcast %cst_12 : f32 to vector<128x128xf32>
    %15 = arith.maximumf %13, %14 : vector<128x128xf32>
    %16 = arith.truncf %15 : vector<128x128xf32> to vector<128x128xbf16>
    %c1_13 = arith.constant 1 : index
    %c0_14 = arith.constant 0 : index
    %c0_15 = arith.constant 0 : index
    %17 = vector.load %arg3[%c1_13, %c0_14, %c0_15] : memref<3x128x128xbf16, #tpu.memory_space<vmem>>, vector<1x128x128xbf16>
    %18 = vector.shape_cast %17 : vector<1x128x128xbf16> to vector<128x128xbf16>
    %cst_16 = arith.constant dense<0.000000e+00> : vector<128x128xf32>
    %19 = tpu.matmul %16, %18, %cst_16 {dimension_numbers = #tpu.dot_dimension_numbers<[1], [0], [0], [1], [0, 0, 1, 1], [], []>} : vector<128x128xbf16>, vector<128x128xbf16>, vector<128x128xf32> -> vector<128x128xf32>
    %20 = arith.truncf %19 : vector<128x128xf32> to vector<128x128xbf16>
    %c2 = arith.constant 2 : index
    %c0_17 = arith.constant 0 : index
    %c0_18 = arith.constant 0 : index
    %21 = vector.load %arg2[%c2, %c0_17, %c0_18] : memref<3x128x128xbf16, #tpu.memory_space<vmem>>, vector<1x128x128xbf16>
    %22 = vector.shape_cast %21 : vector<1x128x128xbf16> to vector<128x128xbf16>
    %cst_19 = arith.constant dense<0.000000e+00> : vector<128x128xf32>
    %23 = tpu.matmul %20, %22, %cst_19 {dimension_numbers = #tpu.dot_dimension_numbers<[1], [0], [0], [1], [0, 0, 1, 1], [], []>} : vector<128x128xbf16>, vector<128x128xbf16>, vector<128x128xf32> -> vector<128x128xf32>
    %cst_20 = arith.constant 0.000000e+00 : f32
    %24 = vector.broadcast %cst_20 : f32 to vector<128x128xf32>
    %25 = arith.maximumf %23, %24 : vector<128x128xf32>
    %26 = arith.truncf %25 : vector<128x128xf32> to vector<128x128xbf16>
    %c2_21 = arith.constant 2 : index
    %c0_22 = arith.constant 0 : index
    %c0_23 = arith.constant 0 : index
    %27 = vector.load %arg3[%c2_21, %c0_22, %c0_23] : memref<3x128x128xbf16, #tpu.memory_space<vmem>>, vector<1x128x128xbf16>
    %28 = vector.shape_cast %27 : vector<1x128x128xbf16> to vector<128x128xbf16>
    %cst_24 = arith.constant dense<0.000000e+00> : vector<128x128xf32>
    %29 = tpu.matmul %26, %28, %cst_24 {dimension_numbers = #tpu.dot_dimension_numbers<[1], [0], [0], [1], [0, 0, 1, 1], [], []>} : vector<128x128xbf16>, vector<128x128xbf16>, vector<128x128xf32> -> vector<128x128xf32>
    %c0_25 = arith.constant 0 : index
    %c0_26 = arith.constant 0 : index
    %30 = vector.load %arg4[%c0_25, %c0_26] : memref<128x128xf32, #tpu.memory_space<vmem>>, vector<128x128xf32>
    tpu.vector_store %arg4[%c0_25, %c0_26], %29 {strides = array<i32>} : memref<128x128xf32, #tpu.memory_space<vmem>>, vector<128x128xf32>,
    return
  }
  func.func @transform_0(%arg0: i32) -> (i32, i32) {
    %c0_i32 = arith.constant 0 : i32
    %c0_i32_0 = arith.constant 0 : i32
    return %arg0, %c0_i32 : i32, i32
  }
  func.func @transform_1(%arg0: i32) -> (i32, i32, i32) {
    %c0_i32 = arith.constant 0 : i32
    %c0_i32_0 = arith.constant 0 : i32
    %c0_i32_1 = arith.constant 0 : i32
    %c0_i32_2 = arith.constant 0 : i32
    return %c0_i32, %c0_i32_0, %c0_i32_1 : i32, i32, i32
  }
  func.func @transform_2(%arg0: i32) -> (i32, i32, i32) {
    %c0_i32 = arith.constant 0 : i32
    %c0_i32_0 = arith.constant 0 : i32
    %c0_i32_1 = arith.constant 0 : i32
    %c0_i32_2 = arith.constant 0 : i32
    return %c0_i32, %c0_i32_0, %c0_i32_1 : i32, i32, i32
  }
  func.func @transform_3(%arg0: i32) -> (i32, i32) {
    %c0_i32 = arith.constant 0 : i32
    %c0_i32_0 = arith.constant 0 : i32
    return %arg0, %c0_i32 : i32, i32
  }
}

</mosaic_0001>

<bundles_post_ra>
// kernel: tpu_custom_call.1
= control target key start
LH: loop header
LB: loop body
LE: loop exit
PB: predicated region body
PF: predicated region fallthrough
CT: control target
= control target key end

     0   :  { %8 = vsyncpa [#allocation3], 0  ;;  %s1747_s0 = inlined_call_operand.hbm [shape: bf16[128,128], index: 0, kind: input, shape index: {}]   ;;  %s1748_s1 = inlined_call_operand.hbm [shape: bf16[3,128,128], index: 1, kind: input, shape index: {}]   ;;  %s1749_s2 = inlined_call_operand.hbm [shape: bf16[3,128,128], index: 2, kind: input, shape index: {}]   ;;  %s1750_s3 = inlined_call_operand.hbm [shape: f32[128,128], index: 3, kind: output, shape index: {}]  }
   0x1   :  { %9 = vsyncpa [#allocation6], 0 }
   0x2   :  { %10 = vsyncpa [#allocation4], 0  ;;  %s1707_s12 = smov [#allocation5]   ;;  %s1708_s14 = smov [#allocation2]  }
   0x3   :  { %s28_s13 = sshll.u32 %s1707_s12, 4  ;;  %s16_s15 = sshll.u32 %s1708_s14, 4  ;;  %s29_s13 = int_to_ptr.vmem [resolvable:$true] %s28_s13  ;;  %s17_s15 = int_to_ptr.vmem [resolvable:$true] %s16_s15 }
   0x4   :  { %s1629_s16 = scalar_lea.vmem %s29_s13, 3072  ;;  %p1634_p1 = scmp.lt.s32.totalorder %s29_s13, %s29_s13 }
   0x5   :  { %p1630_p0 = scmp.ne.s32.totalorder %s29_s13, %s1629_s16  ;;  %p1635_p2 = scmp.lt.s32.totalorder %s1629_s16, %s1629_s16 }
   0x7   :  { %p1636_p3 = por %p1635_p2, %p1634_p1 }
   0x9   :  { %p1637_p4 = pnand %p1636_p3, %p1630_p0 }
   0xb   :  { %1640 = shalt.err (!%p1637_p4)
}
   0xc   :  { %s1709_s17 = smov 64   ;;  %s1710_s18 = smov 4  }
   0xd   :  { %34 = dma.hbm_to_vmem [thread:$0]  %s1748_s1, 3072, %s29_s13, [#allocation6], %s1709_s17, %s1709_s17, %s1710_s18  }
   0xe   :  { %s1649_s21 = scalar_lea.vmem %s17_s15, 1024  ;;  %p1654_p6 = scmp.lt.s32.totalorder %s17_s15, %s17_s15 }
   0xf   :  { %p1650_p5 = scmp.ne.s32.totalorder %s17_s15, %s1649_s21  ;;  %p1655_p7 = scmp.lt.s32.totalorder %s1649_s21, %s1649_s21 }
  0x11   :  { %p1656_p8 = por %p1655_p7, %p1654_p6 }
  0x13   :  { %p1657_p9 = pnand %p1656_p8, %p1650_p5 }
  0x15   :  { %1660 = shalt.err (!%p1657_p9)
}
  0x16   :  { %22 = dma.hbm_to_vmem [thread:$0]  %s1747_s0, 1024, %s17_s15, [#allocation3], %s1709_s17, %s1709_s17, %s1710_s18  }
  0x17   :  { %s1711_s24 = smov [#allocation7]  }
  0x18   :  { %s40_s25 = sshll.u32 %s1711_s24, 4  ;;  %s41_s25 = int_to_ptr.vmem [resolvable:$true] %s40_s25 }
  0x19   :  { %s1669_s26 = scalar_lea.vmem %s41_s25, 3072  ;;  %p1674_p11 = scmp.lt.s32.totalorder %s41_s25, %s41_s25 }
  0x1a   :  { %p1670_p10 = scmp.ne.s32.totalorder %s41_s25, %s1669_s26  ;;  %p1675_p12 = scmp.lt.s32.totalorder %s1669_s26, %s1669_s26 }
  0x1c   :  { %p1676_p13 = por %p1675_p12, %p1674_p11 }
  0x1e   :  { %p1677_p0 = pnand %p1676_p13, %p1670_p10 }
  0x20   :  { %1680 = shalt.err (!%p1677_p0)
}
  0x21   :  { %46 = dma.hbm_to_vmem [thread:$0]  %s1749_s2, 3072, %s41_s25, [#allocation6], %s1709_s17, %s1709_s17, %s1710_s18  }
  0x22   :  { %1701 = dma.done.wait [#allocation3], 1024  }
  0x23   :  { %1702 = vsyncadd [#allocation3], 4294966272 }
  0x24   :  { %1703 = dma.done.wait [#allocation6], 6144  }
  0x25   :  { %1704 = vsyncadd [#allocation6], 4294961152  ;;  %v1565_v0 = vld [vmem:[#allocation5 + $0x38] sm:$0xff]   ;;  %v1566_v1 = vld [vmem:[#allocation5 + $0x30] sm:$0xff]   ;;  %s1712_s0 = smov [#allocation8]  }
  0x26   :  { %1365 = vmatprep.subr.bf16.mxu0 %v1565_v0  ;;  %v1567_v2 = vld [vmem:[#allocation5 + $0x28] sm:$0xff]   ;;  %v1568_v3 = vld [vmem:[#allocation5 + $0x20] sm:$0xff]   ;;  %v1569_v5 = vld [vmem:[#allocation5 + $0x18] sm:$0xff]   ;;  %s1200_s2 = sshll.u32 %s1712_s0, 4  ;;  %s1201_s2 = int_to_ptr.vmem [resolvable:$true] %s1200_s2 }
  0x27   :  { %1366 = vmatpush3.bf16.msra.mxu0 %v1565_v0  ;;  %v1573_v4 = vld [vmem:[#allocation2] sm:$0xff]   ;;  %v1570_v6 = vld [vmem:[#allocation5 + $0x10] sm:$0xff]   ;;  %v1581_v7 = vld [vmem:[#allocation7 + $0x38] sm:$0xff]   ;;  %s1681_s28 = scalar_lea.vmem %s1201_s2, 2048  ;;  %p1686_p2 = scmp.lt.s32.totalorder %s1201_s2, %s1201_s2 }
  0x28   :  { %1367 = vmatprep.subr.bf16.mxu0 %v1566_v1  ;;  %1381 = vmatprep.mubr.bf16.mxu0 %v1573_v4  ;;  %v1582_v8 = vld [vmem:[#allocation7 + $0x30] sm:$0xff]   ;;  %v1571_v9 = vld [vmem:[#allocation5 + $0x8] sm:$0xff]   ;;  %v1572_v11 = vld [vmem:[#allocation5] sm:$0xff]   ;;  %p1682_p1 = scmp.ne.s32.totalorder %s1201_s2, %s1681_s28  ;;  %p1687_p3 = scmp.lt.s32.totalorder %s1681_s28, %s1681_s28 }
  0x29   :  { %1397 = vmatprep.subr.bf16.mxu1 %v1581_v7  ;;  %v1583_v10 = vld [vmem:[#allocation7 + $0x28] sm:$0xff]   ;;  %v1584_v12 = vld [vmem:[#allocation7 + $0x20] sm:$0xff]   ;;  %v1585_v13 = vld [vmem:[#allocation7 + $0x18] sm:$0xff]  }
  0x2a   :  { %1398 = vmatpush3.bf16.msra.mxu1 %v1581_v7  ;;  %v1574_v14 = vld [vmem:[#allocation2 + $0x8] sm:$0xff]   ;;  %v1575_v15 = vld [vmem:[#allocation2 + $0x10] sm:$0xff]   ;;  %v1576_v16 = vld [vmem:[#allocation2 + $0x18] sm:$0xff]   ;;  %p1688_p4 = por %p1687_p3, %p1686_p2 }
  0x2b   :  { %1368 = vmatpush3.bf16.msra.mxu0 %v1566_v1  ;;  %1399 = vmatprep.subr.bf16.mxu1 %v1582_v8  ;;  %v1577_v17 = vld [vmem:[#allocation2 + $0x20] sm:$0xff]   ;;  %v1578_v18 = vld [vmem:[#allocation2 + $0x28] sm:$0xff]   ;;  %v1579_v19 = vld [vmem:[#allocation2 + $0x30] sm:$0xff]  }
  0x2c   :  { %1369 = vmatprep.subr.bf16.mxu0 %v1567_v2  ;;  %v1580_v20 = vld [vmem:[#allocation2 + $0x38] sm:$0xff]   ;;  %v1586_v21 = vld [vmem:[#allocation7 + $0x10] sm:$0xff]   ;;  %v1587_v22 = vld [vmem:[#allocation7 + $0x8] sm:$0xff]   ;;  %p1689_p5 = pnand %p1688_p4, %p1682_p1 }
  0x2d   :  { %v1588_v23 = vld [vmem:[#allocation7] sm:$0xff]   ;;  %v1589_v24 = vld [vmem:[#allocation5 + $0x78] sm:$0xff]   ;;  %v1590_v25 = vld [vmem:[#allocation5 + $0x70] sm:$0xff]  }
  0x2e   :  { %1400 = vmatpush3.bf16.msra.mxu1 %v1582_v8  ;;  %v1591_v26 = vld [vmem:[#allocation5 + $0x68] sm:$0xff]   ;;  %v1592_v27 = vld [vmem:[#allocation5 + $0x60] sm:$0xff]   ;;  %v1593_v28 = vld [vmem:[#allocation5 + $0x58] sm:$0xff]  }
  0x2f   :  { %1370 = vmatpush3.bf16.msra.mxu0 %v1567_v2  ;;  %1401 = vmatprep.subr.bf16.mxu1 %v1583_v10  ;;  %v1594_v29 = vld [vmem:[#allocation5 + $0x50] sm:$0xff]   ;;  %v1596_v7 = vld [vmem:[#allocation5 + $0x40] sm:$0xff]   ;;  %v1597_v8 = vld [vmem:[#allocation7 + $0x78] sm:$0xff]  }
  0x30   :  { %1371 = vmatprep.subr.bf16.mxu0 %v1568_v3 }
  0x32   :  { %1402 = vmatpush3.bf16.msra.mxu1 %v1583_v10  ;;  %v1599_v10 = vld [vmem:[#allocation7 + $0x68] sm:$0xff]  }
  0x33   :  { %1372 = vmatpush3.bf16.msra.mxu0 %v1568_v3  ;;  %1403 = vmatprep.subr.bf16.mxu1 %v1584_v12 }
  0x34   :  { %1373 = vmatprep.subr.bf16.mxu0 %v1569_v5 }
  0x36   :  { %1404 = vmatpush3.bf16.msra.mxu1 %v1584_v12  ;;  %v1601_v12 = vld [vmem:[#allocation7 + $0x58] sm:$0xff]  }
  0x37   :  { %1374 = vmatpush3.bf16.msra.mxu0 %v1569_v5  ;;  %1405 = vmatprep.subr.bf16.mxu1 %v1585_v13 }
  0x38   :  { %1375 = vmatprep.subr.bf16.mxu0 %v1570_v6 }
  0x3a   :  { %1406 = vmatpush3.bf16.msra.mxu1 %v1585_v13  ;;  %v1602_v13 = vld [vmem:[#allocation7 + $0x50] sm:$0xff]  }
  0x3b   :  { %1376 = vmatpush3.bf16.msra.mxu0 %v1570_v6  ;;  %1407 = vmatprep.subr.bf16.mxu1 %v1586_v21  ;;  %v1595_v6 = vld [vmem:[#allocation5 + $0x48] sm:$0xff]  }
  0x3c   :  { %1377 = vmatprep.subr.bf16.mxu0 %v1571_v9 }
  0x3e   :  { %1408 = vmatpush3.bf16.msra.mxu1 %v1586_v21 }
  0x3f   :  { %1378 = vmatpush3.bf16.msra.mxu0 %v1571_v9  ;;  %1409 = vmatprep.subr.bf16.mxu1 %v1587_v22  ;;  %v1598_v9 = vld [vmem:[#allocation7 + $0x70] sm:$0xff]  }
  0x40   :  { %1379 = vmatprep.subr.bf16.mxu0 %v1572_v11 }
  0x42   :  { %1410 = vmatpush3.bf16.msra.mxu1 %v1587_v22 }
  0x43   :  { %1380 = vmatpush3.bf16.msra.mxu0 %v1572_v11  ;;  %1411 = vmatprep.subr.bf16.mxu1 %v1588_v23  ;;  %v1600_v11 = vld [vmem:[#allocation7 + $0x60] sm:$0xff]  }
  0x44   :  { %1429 = vmatprep.subr.bf16.mxu0 %v1589_v24 }
  0x46   :  { %1382 = vmatmul.mubr.bf16.vlgmr.msra.gmra.mxu0 %v1574_v14  ;;  %1412 = vmatpush3.bf16.msra.mxu1 %v1588_v23 }
  0x47   :  { %1385 = vmatprep.mubr.bf16.mxu0 %v1575_v15  ;;  %1430 = vmatpush3.bf16.msra.mxu0 %v1589_v24 }
  0x48   :  { %1431 = vmatprep.subr.bf16.mxu0 %v1590_v25  ;;  %1461 = vmatprep.subr.bf16.mxu1 %v1597_v8 }
  0x4b   :  { %1432 = vmatpush3.bf16.msra.mxu0 %v1590_v25 }
  0x4c   :  { %1433 = vmatprep.subr.bf16.mxu0 %v1591_v26 }
  0x4e   :  { %1386 = vmatmul.mubr.bf16.gmra.mxu0 %v1576_v16 }
  0x4f   :  { %1389 = vmatprep.mubr.bf16.mxu0 %v1577_v17  ;;  %1434 = vmatpush3.bf16.msra.mxu0 %v1591_v26 }
  0x50   :  { %1435 = vmatprep.subr.bf16.mxu0 %v1592_v27 }
  0x53   :  { %1436 = vmatpush3.bf16.msra.mxu0 %v1592_v27 }
  0x54   :  { %1437 = vmatprep.subr.bf16.mxu0 %v1593_v28 }
  0x56   :  { %1390 = vmatmul.mubr.bf16.gmra.mxu0 %v1578_v18 }
  0x57   :  { %1393 = vmatprep.mubr.bf16.mxu0 %v1579_v19  ;;  %1438 = vmatpush3.bf16.msra.mxu0 %v1593_v28 }
  0x58   :  { %1439 = vmatprep.subr.bf16.mxu0 %v1594_v29 }
  0x5b   :  { %1440 = vmatpush3.bf16.msra.mxu0 %v1594_v29 }
  0x5c   :  { %1441 = vmatprep.subr.bf16.mxu0 %v1595_v6 }
  0x5e   :  { %1394 = vmatmul.mubr.bf16.gmra.mxu0 %v1580_v20 }
  0x5f   :  { %1442 = vmatpush3.bf16.msra.mxu0 %v1595_v6 }
  0x60   :  { %1443 = vmatprep.subr.bf16.mxu0 %v1596_v7 }
  0x63   :  { %1444 = vmatpush3.bf16.msra.mxu0 %v1596_v7 }
 0x106   :  { %v1383_v30 = vpop.f32.mrf.mxu0 }
 0x107   :  { %v284_v37 = vmax.f32 %v1383_v30, 0.0 }
 0x108   :  { %v219_v31 = vpop.f32.mrf.mxu0 }
 0x109   :  { %v282_v35 = vmax.f32 %v219_v31, 0.0 }
 0x10a   :  { %v1384_v32 = vpop.f32.mrf.mxu0 }
 0x10b   :  { %v285_v33 = vmax.f32 %v1384_v32, 0.0 }
 0x10c   :  { %v222_v34 = vpop.f32.mrf.mxu0 }
 0x10d   :  { %v283_v36 = vmax.f32 %v222_v34, 0.0  ;;  %v299_v40 = vpack.c.bf16 %v285_v33, %v284_v37 }
 0x10e   :  { %v1387_v38 = vpop.f32.mrf.mxu0 }
 0x10f   :  { %v298_v39 = vpack.c.bf16 %v283_v36, %v282_v35  ;;  %v288_v47 = vmax.f32 %v1387_v38, 0.0  ;;  %v1603_v38 = vld [vmem:[#allocation7 + $0x48] sm:$0xff]  }
 0x110   :  { %v235_v41 = vpop.f32.mrf.mxu0 }
 0x111   :  { %1413 = vmatprep.mubr.bf16.mxu1 %v298_v39  ;;  %v286_v45 = vmax.f32 %v235_v41, 0.0  ;;  %v1604_v39 = vld [vmem:[#allocation7 + $0x40] sm:$0xff]   ;;  %v1606_v41 = vld [vmem:[#allocation5 + $0xb0] sm:$0xff]  }
 0x112   :  { %v1388_v42 = vpop.f32.mrf.mxu0  ;;  %1414 = vmatmul.mubr.bf16.vlgmr.msra.gmra.mxu1 %v299_v40  ;;  %v1605_v40 = vld [vmem:[#allocation5 + $0xb8] sm:$0xff]  }
 0x113   :  { %v289_v43 = vmax.f32 %v1388_v42, 0.0  ;;  %1462 = vmatpush3.bf16.msra.mxu1 %v1597_v8  ;;  %1493 = vmatprep.subr.bf16.mxu0 %v1605_v40  ;;  %v1607_v42 = vld [vmem:[#allocation5 + $0xa8] sm:$0xff]  }
 0x114   :  { %v238_v44 = vpop.f32.mrf.mxu0  ;;  %1463 = vmatprep.subr.bf16.mxu1 %v1598_v9 }
 0x115   :  { %v287_v46 = vmax.f32 %v238_v44, 0.0  ;;  %v301_v50 = vpack.c.bf16 %v289_v43, %v288_v47  ;;  %v1608_v43 = vld [vmem:[#allocation5 + $0xa0] sm:$0xff]   ;;  %v1609_v44 = vld [vmem:[#allocation5 + $0x98] sm:$0xff]  }
 0x116   :  { %v1391_v48 = vpop.f32.mrf.mxu0 }
 0x117   :  { %v300_v49 = vpack.c.bf16 %v287_v46, %v286_v45  ;;  %v292_v57 = vmax.f32 %v1391_v48, 0.0  ;;  %1464 = vmatpush3.bf16.msra.mxu1 %v1598_v9  ;;  %v1610_v45 = vld [vmem:[#allocation5 + $0x90] sm:$0xff]  }
 0x118   :  { %v251_v51 = vpop.f32.mrf.mxu0  ;;  %1465 = vmatprep.subr.bf16.mxu1 %v1599_v10 }
 0x119   :  { %1417 = vmatprep.mubr.bf16.mxu1 %v300_v49  ;;  %v290_v55 = vmax.f32 %v251_v51, 0.0 }
 0x11a   :  { %v1392_v52 = vpop.f32.mrf.mxu0  ;;  %1418 = vmatmul.mubr.bf16.gmra.mxu1 %v301_v50 }
 0x11b   :  { %v293_v53 = vmax.f32 %v1392_v52, 0.0  ;;  %1466 = vmatpush3.bf16.msra.mxu1 %v1599_v10 }
 0x11c   :  { %v254_v54 = vpop.f32.mrf.mxu0  ;;  %1467 = vmatprep.subr.bf16.mxu1 %v1600_v11 }
 0x11d   :  { %v291_v56 = vmax.f32 %v254_v54, 0.0  ;;  %v303_v60 = vpack.c.bf16 %v293_v53, %v292_v57 }
 0x11e   :  { %v1395_v58 = vpop.f32.mrf.mxu0 }
 0x11f   :  { %v302_v59 = vpack.c.bf16 %v291_v56, %v290_v55  ;;  %v296_v3 = vmax.f32 %v1395_v58, 0.0  ;;  %1468 = vmatpush3.bf16.msra.mxu1 %v1600_v11 }
 0x120   :  { %v267_v61 = vpop.f32.mrf.mxu0  ;;  %1469 = vmatprep.subr.bf16.mxu1 %v1601_v12 }
 0x121   :  { %1421 = vmatprep.mubr.bf16.mxu1 %v302_v59  ;;  %v294_v1 = vmax.f32 %v267_v61, 0.0 }
 0x122   :  { %v1396_v62 = vpop.f32.mrf.mxu0  ;;  %1422 = vmatmul.mubr.bf16.gmra.mxu1 %v303_v60 }
 0x123   :  { %v297_v63 = vmax.f32 %v1396_v62, 0.0  ;;  %1470 = vmatpush3.bf16.msra.mxu1 %v1601_v12 }
 0x124   :  { %v270_v0 = vpop.f32.mrf.mxu0  ;;  %1471 = vmatprep.subr.bf16.mxu1 %v1602_v13 }
 0x125   :  { %v295_v2 = vmax.f32 %v270_v0, 0.0  ;;  %v305_v5 = vpack.c.bf16 %v297_v63, %v296_v3 }
 0x127   :  { %v304_v4 = vpack.c.bf16 %v295_v2, %v294_v1  ;;  %1472 = vmatpush3.bf16.msra.mxu1 %v1602_v13 }
 0x128   :  { %1473 = vmatprep.subr.bf16.mxu1 %v1603_v38 }
 0x129   :  { %1425 = vmatprep.mubr.bf16.mxu1 %v304_v4 }
 0x12a   :  { %1426 = vmatmul.mubr.bf16.gmra.mxu1 %v305_v5 }
 0x12b   :  { %1474 = vmatpush3.bf16.msra.mxu1 %v1603_v38 }
 0x12c   :  { %1475 = vmatprep.subr.bf16.mxu1 %v1604_v39 }
 0x12f   :  { %1476 = vmatpush3.bf16.msra.mxu1 %v1604_v39 }
 0x1d2   :  { %v1415_v14 = vpop.f32.mrf.mxu1 }
 0x1d4   :  { %v404_v15 = vpop.f32.mrf.mxu1 }
 0x1d6   :  { %v1416_v16 = vpop.f32.mrf.mxu1 }
 0x1d7   :  { %v468_v19 = vpack.c.bf16 %v1416_v16, %v1415_v14 }
 0x1d8   :  { %v407_v17 = vpop.f32.mrf.mxu1 }
 0x1d9   :  { %v467_v18 = vpack.c.bf16 %v407_v17, %v404_v15 }
 0x1da   :  { %v1419_v20 = vpop.f32.mrf.mxu1 }
 0x1db   :  { %1445 = vmatprep.mubr.bf16.mxu0 %v467_v18 }
 0x1dc   :  { %v420_v21 = vpop.f32.mrf.mxu1  ;;  %1446 = vmatmul.mubr.bf16.vlgmr.msra.gmra.mxu0 %v468_v19 }
 0x1dd   :  { %1494 = vmatpush3.bf16.msra.mxu0 %v1605_v40 }
 0x1de   :  { %v1420_v22 = vpop.f32.mrf.mxu1  ;;  %1495 = vmatprep.subr.bf16.mxu0 %v1606_v41 }
 0x1df   :  { %v470_v25 = vpack.c.bf16 %v1420_v22, %v1419_v20  ;;  %v1611_v22 = vld [vmem:[#allocation5 + $0x88] sm:$0xff]  }
 0x1e0   :  { %v423_v23 = vpop.f32.mrf.mxu1 }
 0x1e1   :  { %v469_v24 = vpack.c.bf16 %v423_v23, %v420_v21  ;;  %1496 = vmatpush3.bf16.msra.mxu0 %v1606_v41  ;;  %v1612_v23 = vld [vmem:[#allocation5 + $0x80] sm:$0xff]  }
 0x1e2   :  { %v1423_v26 = vpop.f32.mrf.mxu1  ;;  %1497 = vmatprep.subr.bf16.mxu0 %v1607_v42 }
 0x1e3   :  { %1449 = vmatprep.mubr.bf16.mxu0 %v469_v24  ;;  %v1613_v24 = vld [vmem:[#allocation7 + $0xb8] sm:$0xff]  }
 0x1e4   :  { %v436_v27 = vpop.f32.mrf.mxu1  ;;  %1450 = vmatmul.mubr.bf16.gmra.mxu0 %v470_v25  ;;  %v1614_v25 = vld [vmem:[#allocation7 + $0xb0] sm:$0xff]   ;;  %1525 = vmatprep.subr.bf16.mxu1 %v1613_v24 }
 0x1e5   :  { %1498 = vmatpush3.bf16.msra.mxu0 %v1607_v42 }
 0x1e6   :  { %v1424_v28 = vpop.f32.mrf.mxu1  ;;  %1499 = vmatprep.subr.bf16.mxu0 %v1608_v43 }
 0x1e7   :  { %v472_v31 = vpack.c.bf16 %v1424_v28, %v1423_v26  ;;  %v1615_v26 = vld [vmem:[#allocation7 + $0xa8] sm:$0xff]   ;;  %v1617_v28 = vld [vmem:[#allocation7 + $0x98] sm:$0xff]  }
 0x1e8   :  { %v439_v29 = vpop.f32.mrf.mxu1 }
 0x1e9   :  { %v471_v30 = vpack.c.bf16 %v439_v29, %v436_v27  ;;  %1500 = vmatpush3.bf16.msra.mxu0 %v1608_v43  ;;  %v1616_v27 = vld [vmem:[#allocation7 + $0xa0] sm:$0xff]   ;;  %v1618_v29 = vld [vmem:[#allocation7 + $0x90] sm:$0xff]  }
 0x1ea   :  { %v1427_v32 = vpop.f32.mrf.mxu1  ;;  %1501 = vmatprep.subr.bf16.mxu0 %v1609_v44 }
 0x1eb   :  { %1453 = vmatprep.mubr.bf16.mxu0 %v471_v30 }
 0x1ec   :  { %v452_v33 = vpop.f32.mrf.mxu1  ;;  %1454 = vmatmul.mubr.bf16.gmra.mxu0 %v472_v31 }
 0x1ed   :  { %1502 = vmatpush3.bf16.msra.mxu0 %v1609_v44 }
 0x1ee   :  { %v1428_v34 = vpop.f32.mrf.mxu1  ;;  %1503 = vmatprep.subr.bf16.mxu0 %v1610_v45 }
 0x1ef   :  { %v474_v37 = vpack.c.bf16 %v1428_v34, %v1427_v32 }
 0x1f0   :  { %v455_v35 = vpop.f32.mrf.mxu1 }
 0x1f1   :  { %v473_v36 = vpack.c.bf16 %v455_v35, %v452_v33  ;;  %1504 = vmatpush3.bf16.msra.mxu0 %v1610_v45 }
 0x1f2   :  { %1505 = vmatprep.subr.bf16.mxu0 %v1611_v22 }
 0x1f3   :  { %1457 = vmatprep.mubr.bf16.mxu0 %v473_v36 }
 0x1f4   :  { %1458 = vmatmul.mubr.bf16.gmra.mxu0 %v474_v37 }
 0x1f5   :  { %1506 = vmatpush3.bf16.msra.mxu0 %v1611_v22 }
 0x1f6   :  { %1507 = vmatprep.subr.bf16.mxu0 %v1612_v23 }
 0x1f9   :  { %1508 = vmatpush3.bf16.msra.mxu0 %v1612_v23 }
 0x29c   :  { %v1447_v46 = vpop.f32.mrf.mxu0 }
 0x29d   :  { %v639_v53 = vmax.f32 %v1447_v46, 0.0 }
 0x29e   :  { %v574_v47 = vpop.f32.mrf.mxu0 }
 0x29f   :  { %v637_v51 = vmax.f32 %v574_v47, 0.0 }
 0x2a0   :  { %v1448_v48 = vpop.f32.mrf.mxu0 }
 0x2a1   :  { %v640_v49 = vmax.f32 %v1448_v48, 0.0 }
 0x2a2   :  { %v577_v50 = vpop.f32.mrf.mxu0 }
 0x2a3   :  { %v638_v52 = vmax.f32 %v577_v50, 0.0  ;;  %v654_v56 = vpack.c.bf16 %v640_v49, %v639_v53 }
 0x2a4   :  { %v1451_v54 = vpop.f32.mrf.mxu0 }
 0x2a5   :  { %v653_v55 = vpack.c.bf16 %v638_v52, %v637_v51  ;;  %v643_v63 = vmax.f32 %v1451_v54, 0.0  ;;  %v1619_v54 = vld [vmem:[#allocation7 + $0x88] sm:$0xff]  }
 0x2a6   :  { %v590_v57 = vpop.f32.mrf.mxu0 }
 0x2a7   :  { %1477 = vmatprep.mubr.bf16.mxu1 %v653_v55  ;;  %v641_v61 = vmax.f32 %v590_v57, 0.0  ;;  %v1620_v55 = vld [vmem:[#allocation7 + $0x80] sm:$0xff]  }
 0x2a8   :  { %v1452_v58 = vpop.f32.mrf.mxu0  ;;  %1478 = vmatmul.mubr.bf16.vlgmr.msra.gmra.mxu1 %v654_v56 }
 0x2a9   :  { %v644_v59 = vmax.f32 %v1452_v58, 0.0  ;;  %1526 = vmatpush3.bf16.msra.mxu1 %v1613_v24 }
 0x2aa   :  { %v593_v60 = vpop.f32.mrf.mxu0  ;;  %1527 = vmatprep.subr.bf16.mxu1 %v1614_v25 }
 0x2ab   :  { %v642_v62 = vmax.f32 %v593_v60, 0.0  ;;  %v656_v2 = vpack.c.bf16 %v644_v59, %v643_v63 }
 0x2ac   :  { %v1455_v0 = vpop.f32.mrf.mxu0 }
 0x2ad   :  { %v655_v1 = vpack.c.bf16 %v642_v62, %v641_v61  ;;  %v647_v9 = vmax.f32 %v1455_v0, 0.0  ;;  %1528 = vmatpush3.bf16.msra.mxu1 %v1614_v25 }
 0x2ae   :  { %v606_v3 = vpop.f32.mrf.mxu0  ;;  %1529 = vmatprep.subr.bf16.mxu1 %v1615_v26 }
 0x2af   :  { %1481 = vmatprep.mubr.bf16.mxu1 %v655_v1  ;;  %v645_v7 = vmax.f32 %v606_v3, 0.0 }
 0x2b0   :  { %v1456_v4 = vpop.f32.mrf.mxu0  ;;  %1482 = vmatmul.mubr.bf16.gmra.mxu1 %v656_v2 }
 0x2b1   :  { %v648_v5 = vmax.f32 %v1456_v4, 0.0  ;;  %1530 = vmatpush3.bf16.msra.mxu1 %v1615_v26 }
 0x2b2   :  { %v609_v6 = vpop.f32.mrf.mxu0  ;;  %1531 = vmatprep.subr.bf16.mxu1 %v1616_v27 }
 0x2b3   :  { %v646_v8 = vmax.f32 %v609_v6, 0.0  ;;  %v658_v12 = vpack.c.bf16 %v648_v5, %v647_v9 }
 0x2b4   :  { %v1459_v10 = vpop.f32.mrf.mxu0 }
 0x2b5   :  { %v657_v11 = vpack.c.bf16 %v646_v8, %v645_v7  ;;  %v651_v19 = vmax.f32 %v1459_v10, 0.0  ;;  %1532 = vmatpush3.bf16.msra.mxu1 %v1616_v27 }
 0x2b6   :  { %v622_v13 = vpop.f32.mrf.mxu0  ;;  %1533 = vmatprep.subr.bf16.mxu1 %v1617_v28 }
 0x2b7   :  { %1485 = vmatprep.mubr.bf16.mxu1 %v657_v11  ;;  %v649_v17 = vmax.f32 %v622_v13, 0.0 }
 0x2b8   :  { %v1460_v14 = vpop.f32.mrf.mxu0  ;;  %1486 = vmatmul.mubr.bf16.gmra.mxu1 %v658_v12 }
 0x2b9   :  { %v652_v15 = vmax.f32 %v1460_v14, 0.0  ;;  %1534 = vmatpush3.bf16.msra.mxu1 %v1617_v28 }
 0x2ba   :  { %v625_v16 = vpop.f32.mrf.mxu0  ;;  %1535 = vmatprep.subr.bf16.mxu1 %v1618_v29 }
 0x2bb   :  { %v650_v18 = vmax.f32 %v625_v16, 0.0  ;;  %v660_v21 = vpack.c.bf16 %v652_v15, %v651_v19 }
 0x2bd   :  { %v659_v20 = vpack.c.bf16 %v650_v18, %v649_v17  ;;  %1536 = vmatpush3.bf16.msra.mxu1 %v1618_v29 }
 0x2be   :  { %1537 = vmatprep.subr.bf16.mxu1 %v1619_v54 }
 0x2bf   :  { %1489 = vmatprep.mubr.bf16.mxu1 %v659_v20 }
 0x2c0   :  { %1490 = vmatmul.mubr.bf16.gmra.mxu1 %v660_v21 }
 0x2c1   :  { %1538 = vmatpush3.bf16.msra.mxu1 %v1619_v54 }
 0x2c2   :  { %1539 = vmatprep.subr.bf16.mxu1 %v1620_v55 }
 0x2c5   :  { %1540 = vmatpush3.bf16.msra.mxu1 %v1620_v55 }
 0x368   :  { %v1479_v30 = vpop.f32.mrf.mxu1 }
 0x36a   :  { %v760_v31 = vpop.f32.mrf.mxu1 }
 0x36c   :  { %v1480_v32 = vpop.f32.mrf.mxu1 }
 0x36d   :  { %v824_v35 = vpack.c.bf16 %v1480_v32, %v1479_v30 }
 0x36e   :  { %v763_v33 = vpop.f32.mrf.mxu1 }
 0x36f   :  { %v823_v34 = vpack.c.bf16 %v763_v33, %v760_v31 }
 0x370   :  { %v1483_v36 = vpop.f32.mrf.mxu1 }
 0x371   :  { %1509 = vmatprep.mubr.bf16.mxu0 %v823_v34 }
 0x372   :  { %v776_v37 = vpop.f32.mrf.mxu1  ;;  %1510 = vmatmul.mubr.bf16.vlgmr.msra.gmra.mxu0 %v824_v35 }
 0x374   :  { %v1484_v38 = vpop.f32.mrf.mxu1 }
 0x375   :  { %v826_v41 = vpack.c.bf16 %v1484_v38, %v1483_v36 }
 0x376   :  { %v779_v39 = vpop.f32.mrf.mxu1 }
 0x377   :  { %v825_v40 = vpack.c.bf16 %v779_v39, %v776_v37 }
 0x378   :  { %v1487_v42 = vpop.f32.mrf.mxu1 }
 0x379   :  { %1513 = vmatprep.mubr.bf16.mxu0 %v825_v40 }
 0x37a   :  { %v792_v43 = vpop.f32.mrf.mxu1  ;;  %1514 = vmatmul.mubr.bf16.gmra.mxu0 %v826_v41 }
 0x37c   :  { %v1488_v44 = vpop.f32.mrf.mxu1 }
 0x37d   :  { %v828_v47 = vpack.c.bf16 %v1488_v44, %v1487_v42 }
 0x37e   :  { %v795_v45 = vpop.f32.mrf.mxu1 }
 0x37f   :  { %v827_v46 = vpack.c.bf16 %v795_v45, %v792_v43 }
 0x380   :  { %v1491_v48 = vpop.f32.mrf.mxu1 }
 0x381   :  { %1517 = vmatprep.mubr.bf16.mxu0 %v827_v46 }
 0x382   :  { %v808_v49 = vpop.f32.mrf.mxu1  ;;  %1518 = vmatmul.mubr.bf16.gmra.mxu0 %v828_v47 }
 0x384   :  { %v1492_v50 = vpop.f32.mrf.mxu1 }
 0x385   :  { %v830_v53 = vpack.c.bf16 %v1492_v50, %v1491_v48 }
 0x386   :  { %v811_v51 = vpop.f32.mrf.mxu1 }
 0x387   :  { %v829_v52 = vpack.c.bf16 %v811_v51, %v808_v49 }
 0x389   :  { %1521 = vmatprep.mubr.bf16.mxu0 %v829_v52 }
 0x38a   :  { %1522 = vmatmul.mubr.bf16.gmra.mxu0 %v830_v53 }
 0x432   :  { %v1511_v56 = vpop.f32.mrf.mxu0 }
 0x433   :  { %v995_v63 = vmax.f32 %v1511_v56, 0.0 }
 0x434   :  { %v930_v57 = vpop.f32.mrf.mxu0 }
 0x435   :  { %v993_v61 = vmax.f32 %v930_v57, 0.0 }
 0x436   :  { %v1512_v58 = vpop.f32.mrf.mxu0 }
 0x437   :  { %v996_v59 = vmax.f32 %v1512_v58, 0.0 }
 0x438   :  { %v933_v60 = vpop.f32.mrf.mxu0 }
 0x439   :  { %v994_v62 = vmax.f32 %v933_v60, 0.0  ;;  %v1010_v2 = vpack.c.bf16 %v996_v59, %v995_v63 }
 0x43a   :  { %v1515_v0 = vpop.f32.mrf.mxu0 }
 0x43b   :  { %v1009_v1 = vpack.c.bf16 %v994_v62, %v993_v61  ;;  %v999_v9 = vmax.f32 %v1515_v0, 0.0 }
 0x43c   :  { %v946_v3 = vpop.f32.mrf.mxu0 }
 0x43d   :  { %1541 = vmatprep.mubr.bf16.mxu1 %v1009_v1  ;;  %v997_v7 = vmax.f32 %v946_v3, 0.0 }
 0x43e   :  { %v1516_v4 = vpop.f32.mrf.mxu0  ;;  %1542 = vmatmul.mubr.bf16.vlgmr.msra.gmra.mxu1 %v1010_v2 }
 0x43f   :  { %v1000_v5 = vmax.f32 %v1516_v4, 0.0 }
 0x440   :  { %v949_v6 = vpop.f32.mrf.mxu0 }
 0x441   :  { %v998_v8 = vmax.f32 %v949_v6, 0.0  ;;  %v1012_v12 = vpack.c.bf16 %v1000_v5, %v999_v9 }
 0x442   :  { %v1519_v10 = vpop.f32.mrf.mxu0 }
 0x443   :  { %v1011_v11 = vpack.c.bf16 %v998_v8, %v997_v7  ;;  %v1003_v19 = vmax.f32 %v1519_v10, 0.0 }
 0x444   :  { %v962_v13 = vpop.f32.mrf.mxu0 }
 0x445   :  { %1545 = vmatprep.mubr.bf16.mxu1 %v1011_v11  ;;  %v1001_v17 = vmax.f32 %v962_v13, 0.0 }
 0x446   :  { %v1520_v14 = vpop.f32.mrf.mxu0  ;;  %1546 = vmatmul.mubr.bf16.gmra.mxu1 %v1012_v12 }
 0x447   :  { %v1004_v15 = vmax.f32 %v1520_v14, 0.0 }
 0x448   :  { %v965_v16 = vpop.f32.mrf.mxu0 }
 0x449   :  { %v1002_v18 = vmax.f32 %v965_v16, 0.0  ;;  %v1014_v22 = vpack.c.bf16 %v1004_v15, %v1003_v19 }
 0x44a   :  { %v1523_v20 = vpop.f32.mrf.mxu0 }
 0x44b   :  { %v1013_v21 = vpack.c.bf16 %v1002_v18, %v1001_v17  ;;  %v1007_v29 = vmax.f32 %v1523_v20, 0.0 }
 0x44c   :  { %v978_v23 = vpop.f32.mrf.mxu0 }
 0x44d   :  { %1549 = vmatprep.mubr.bf16.mxu1 %v1013_v21  ;;  %v1005_v27 = vmax.f32 %v978_v23, 0.0 }
 0x44e   :  { %v1524_v24 = vpop.f32.mrf.mxu0  ;;  %1550 = vmatmul.mubr.bf16.gmra.mxu1 %v1014_v22 }
 0x44f   :  { %v1008_v25 = vmax.f32 %v1524_v24, 0.0 }
 0x450   :  { %v981_v26 = vpop.f32.mrf.mxu0 }
 0x451   :  { %v1006_v28 = vmax.f32 %v981_v26, 0.0  ;;  %v1016_v31 = vpack.c.bf16 %v1008_v25, %v1007_v29 }
 0x453   :  { %v1015_v30 = vpack.c.bf16 %v1006_v28, %v1005_v27 }
 0x455   :  { %1553 = vmatprep.mubr.bf16.mxu1 %v1015_v30 }
 0x456   :  { %1554 = vmatmul.mubr.bf16.gmra.mxu1 %v1016_v31 }
 0x4fe   :  { %v1543_v32 = vpop.f32.mrf.mxu1 }
 0x4ff   :  { %1181 = vst [vmem:[#allocation8 + $0x10] sm:$0xff] %v1543_v32 }
 0x500   :  { %v1116_v33 = vpop.f32.mrf.mxu1 }
 0x501   :  { %1179 = vst [vmem:[#allocation8] sm:$0xff] %v1116_v33 }
 0x502   :  { %v1544_v34 = vpop.f32.mrf.mxu1 }
 0x503   :  { %1182 = vst [vmem:[#allocation8 + $0x18] sm:$0xff] %v1544_v34 }
 0x504   :  { %v1119_v35 = vpop.f32.mrf.mxu1 }
 0x505   :  { %1180 = vst [vmem:[#allocation8 + $0x8] sm:$0xff] %v1119_v35 }
 0x506   :  { %v1547_v36 = vpop.f32.mrf.mxu1 }
 0x507   :  { %1185 = vst [vmem:[#allocation8 + $0x30] sm:$0xff] %v1547_v36 }
 0x508   :  { %v1132_v37 = vpop.f32.mrf.mxu1 }
 0x509   :  { %1183 = vst [vmem:[#allocation8 + $0x20] sm:$0xff] %v1132_v37 }
 0x50a   :  { %v1548_v38 = vpop.f32.mrf.mxu1 }
 0x50b   :  { %1186 = vst [vmem:[#allocation8 + $0x38] sm:$0xff] %v1548_v38 }
 0x50c   :  { %v1135_v39 = vpop.f32.mrf.mxu1 }
 0x50d   :  { %1184 = vst [vmem:[#allocation8 + $0x28] sm:$0xff] %v1135_v39 }
 0x50e   :  { %v1551_v40 = vpop.f32.mrf.mxu1 }
 0x50f   :  { %1189 = vst [vmem:[#allocation8 + $0x50] sm:$0xff] %v1551_v40 }
 0x510   :  { %v1148_v41 = vpop.f32.mrf.mxu1 }
 0x511   :  { %1187 = vst [vmem:[#allocation8 + $0x40] sm:$0xff] %v1148_v41 }
 0x512   :  { %v1552_v42 = vpop.f32.mrf.mxu1 }
 0x513   :  { %1190 = vst [vmem:[#allocation8 + $0x58] sm:$0xff] %v1552_v42 }
 0x514   :  { %v1151_v43 = vpop.f32.mrf.mxu1 }
 0x515   :  { %1188 = vst [vmem:[#allocation8 + $0x48] sm:$0xff] %v1151_v43 }
 0x516   :  { %v1555_v44 = vpop.f32.mrf.mxu1 }
 0x517   :  { %1193 = vst [vmem:[#allocation8 + $0x70] sm:$0xff] %v1555_v44 }
 0x518   :  { %v1164_v45 = vpop.f32.mrf.mxu1 }
 0x519   :  { %1191 = vst [vmem:[#allocation8 + $0x60] sm:$0xff] %v1164_v45 }
 0x51a   :  { %v1556_v46 = vpop.f32.mrf.mxu1 }
 0x51b   :  { %1194 = vst [vmem:[#allocation8 + $0x78] sm:$0xff] %v1556_v46 }
 0x51c   :  { %v1167_v47 = vpop.f32.mrf.mxu1 }
 0x51d   :  { %1192 = vst [vmem:[#allocation8 + $0x68] sm:$0xff] %v1167_v47 }
 0x51e   :  { %1692 = shalt.err (!%p1689_p5)
}
 0x51f   :  { %s1713_s29 = smov 128   ;;  %s1714_s30 = smov 8  }
 0x520   :  { %1206 = dma.vmem_to_hbm [thread:$0]  %s1201_s2, 2048, %s1750_s3, [#allocation4], %s1713_s29, %s1713_s29, %s1714_s30  }
 0x521   :  { %1705 = dma.done.wait [#allocation4], 2048  }
 0x522   :  { %1706 = vsyncadd [#allocation4], 4294965248 }
 0x523   :  { %1210 = vsyncpa [#allocation3], 1 }
 0x524   :  { %1211 = vsyncpa [#allocation6], 1 }
 0x525   :  { %1212 = vsyncpa [#allocation4], 1 }

</bundles_post_ra>
